<compile_context>
chip_gen: v7x
topology: tpu7x:2x2x1
jax: 0.10.0
libtpu: 0.0.40
codegen_flags: <defaults>
</compile_context>

<pallas_src>
import functools

import jax
import jax.numpy as jnp
from jax.experimental import pallas as pl
from jax.experimental.pallas import tpu as pltpu


# ----------------------------------------------------------------------------
# VMEM budgeting (generation aware: v7x has 64 MiB, v5e/v6e have 128 MiB)
# ----------------------------------------------------------------------------
def _tpu_vmem_capacity():
    try:
        return int(pltpu.get_tpu_info().vmem_capacity_bytes)
    except Exception:
        return 64 * 1024 * 1024  # conservative (v7x-sized) fallback


_VMEM_CAPACITY = _tpu_vmem_capacity()
# Scoped VMEM limit handed to Mosaic: ~3/4 of physical, capped at 100 MiB
# (-> ~96 MiB on 128-MiB v5e/v6e, ~48 MiB on 64-MiB v7x).
VMEM_LIMIT_BYTES = int(min(100 * 1024 * 1024, (_VMEM_CAPACITY * 3) // 4))
# Per-block working-set budget; blocked refs are double-buffered by the
# pipeline, so //4 of the limit keeps ~half the limit for weights/scratch.
_BLOCK_BUDGET_BYTES = max(4 * 1024 * 1024, VMEM_LIMIT_BYTES // 4)


def _compiler_params(dimension_semantics):
    return pltpu.CompilerParams(dimension_semantics=dimension_semantics,
                                vmem_limit_bytes=VMEM_LIMIT_BYTES)


def _round_up(x, m):
    return ((x + m - 1) // m) * m


def _pick_tile_h(H, bytes_per_row, *, even=False, min_steps=1):
    """Largest divisor of H whose block working set fits the VMEM budget."""
    cap = max(1, _BLOCK_BUDGET_BYTES // max(bytes_per_row, 1))
    divs = [d for d in range(1, H + 1) if H % d == 0]
    if even:
        ev = [d for d in divs if d % 2 == 0]
        if ev:
            divs = ev
    cand = [d for d in divs if d <= cap]
    if not cand:
        cand = divs[:1]
    if min_steps > 1:
        small = [d for d in cand if H // d >= min_steps]
        if small:
            cand = small
    return max(cand)


# ----------------------------------------------------------------------------
# Runtime capability probes (cheap, cached) -> graceful fallbacks
# ----------------------------------------------------------------------------
_BUFFERED_ONE_OK = None


def _buffered_one_supported():
    """Probe pl.Buffered(1) single-buffering for grid-invariant inputs."""
    global _BUFFERED_ONE_OK
    if _BUFFERED_ONE_OK is None:
        try:
            def k(x_ref, w_ref, o_ref):
                o_ref[...] = x_ref[...] + w_ref[...]

            spec_w = pl.BlockSpec((8, 128), lambda i: (0, 0),
                                  pipeline_mode=pl.Buffered(1))
            y = pl.pallas_call(
                k, grid=(2,),
                out_shape=jax.ShapeDtypeStruct((16, 128), jnp.float32),
                in_specs=[pl.BlockSpec((8, 128), lambda i: (i, 0)), spec_w],
                out_specs=pl.BlockSpec((8, 128), lambda i: (i, 0)),
            )(jnp.ones((16, 128), jnp.float32), jnp.ones((8, 128), jnp.float32))
            jax.block_until_ready(y)
            _BUFFERED_ONE_OK = bool(jnp.all(y == 2.0))
        except Exception:
            _BUFFERED_ONE_OK = False
    return _BUFFERED_ONE_OK


def _const_spec(block_shape):
    """BlockSpec for grid-invariant (weight-like) blocks; single-buffered if possible."""
    zeros = (0,) * len(block_shape)
    index_map = lambda *args: zeros
    if _buffered_one_supported():
        return pl.BlockSpec(block_shape, index_map, pipeline_mode=pl.Buffered(1))
    return pl.BlockSpec(block_shape, index_map)


_POOL_FUSION_OK = None


def _pool_fusion_supported():
    """Probe the fused conv+2x2-maxpool epilogue (sublane-strided pool reads)."""
    global _POOL_FUSION_OK
    if _POOL_FUSION_OK is None:
        try:
            x = jnp.ones((1, 4, 4, 8), jnp.float32)
            w = jnp.full((3, 3, 8, 8), 0.01, jnp.float32)
            b = jnp.zeros((8,), jnp.float32)
            bp, pooled = conv3x3_fused(x, w, b, relu=True, pool=True)
            jax.block_until_ready((bp, pooled))
            _POOL_FUSION_OK = bool(jnp.all(jnp.isfinite(pooled.astype(jnp.float32))))
        except Exception:
            _POOL_FUSION_OK = False
    return _POOL_FUSION_OK


# ----------------------------------------------------------------------------
# Pallas kernels
# ----------------------------------------------------------------------------
def _conv3x3_kernel(*refs, out_w, has_scale, has_x2, has_residual, relu, pool):
    """3x3 conv tile: 3 (or 6) MXU matmuls (K = 3*Cin) + fused f32 epilogue.

    Inputs : x(row-triple), w(3,K3,Cout), shift, [scale], [x2, w2], [residual]
    Outputs: out (bf16), [pooled (bf16)]   Scratch: [pool staging f32]
    """
    refs = list(refs)
    i = 0
    x_ref = refs[i]; i += 1
    w_ref = refs[i]; i += 1
    shift_ref = refs[i]; i += 1
    scale_ref = None
    if has_scale:
        scale_ref = refs[i]; i += 1
    x2_ref = w2_ref = None
    if has_x2:
        x2_ref = refs[i]; i += 1
        w2_ref = refs[i]; i += 1
    res_ref = None
    if has_residual:
        res_ref = refs[i]; i += 1
    out_ref = refs[i]; i += 1
    pool_ref = pool_sc = None
    if pool:
        pool_ref = refs[i]; i += 1
        pool_sc = refs[i]; i += 1

    th = out_ref.shape[1]
    cout = out_ref.shape[3]

    acc = None
    for dx in range(3):                              # 3 matmuls, K = 3*Cin
        tap = x_ref[0, :, dx:dx + out_w, :].reshape(th * out_w, -1)
        part = jnp.dot(tap, w_ref[dx], preferred_element_type=jnp.float32)
        acc = part if acc is None else acc + part
    if has_x2:                                       # split-K skip connection
        for dx in range(3):
            tap = x2_ref[0, :, dx:dx + out_w, :].reshape(th * out_w, -1)
            acc = acc + jnp.dot(tap, w2_ref[dx],
                                preferred_element_type=jnp.float32)
    acc = acc.reshape(th, out_w, cout)

    if has_scale:                                    # eval-mode BN: scale*conv
        acc = acc * scale_ref[...]
    acc = acc + shift_ref[...]                       # bias (+ folded BN shift)
    if has_residual:
        acc = acc + res_ref[0].astype(jnp.float32)
    if relu:
        acc = jnp.maximum(acc, 0.0)
    out_ref[0] = acc.astype(out_ref.dtype)

    if pool:
        # H direction: split the major dim (layout preserving) and max.
        a4 = acc.reshape(th // 2, 2, out_w, cout)
        pool_sc[...] = jnp.maximum(a4[:, 0], a4[:, 1])
        # W direction: strided sublane reads from the staging scratch.
        ev = pool_sc[:, pl.ds(0, out_w // 2, 2), :]
        od = pool_sc[:, pl.ds(1, out_w // 2, 2), :]
        pool_ref[0] = jnp.maximum(ev, od).astype(pool_ref.dtype)


def _matmul_act_kernel(x_ref, w_ref, b_ref, out_ref, *, act):
    """(TM, Cin) @ (Cin, Cout) + bias + activation (relu/tanh/sigmoid/none)."""
    y = jnp.dot(x_ref[...], w_ref[...],
                preferred_element_type=jnp.float32) + b_ref[...]
    if act == "relu":
        y = jnp.maximum(y, 0.0)
    elif act == "tanh":
        y = jnp.tanh(y)
    elif act == "sigmoid":
        y = 1.0 / (1.0 + jnp.exp(-y))
    out_ref[...] = y.astype(out_ref.dtype)


# ----------------------------------------------------------------------------
# Kernel wrappers
# ----------------------------------------------------------------------------
def conv3x3_fused(x, w, b, *, x2=None, w2=None, bn=None, residual=None,
                  relu=True, pool=False, out_dtype=jnp.bfloat16):
    """3x3 'same' conv + bias (+ eval BN) (+ residual) (+ ReLU) (+ 2x2 maxpool).

    x:  (N,H,W,Cin);  w: (3,3,Cin,Cout) HWIO;  b: (Cout,)
    x2: optional second input (skip) with its own weight w2 (split along Cin).
    bn: optional (scale, shift), each (Cout,);  residual: optional (N,H,W,Cout)
    pool=True additionally returns the 2x2-maxpooled activation.
    """
    N, H, W, Cin = x.shape
    Cout = w.shape[-1]
    Wp = W + 2
    K3 = 3 * Cin
    if pool:
        assert H % 2 == 0 and W % 2 == 0

    def row_triple(t):
        # xr[n,h,q,dy*Cin+c] = xpad[n,h+dy,q,c]  (bf16)
        tp = jnp.pad(t, ((0, 0), (1, 1), (1, 1), (0, 0)))
        return jnp.concatenate([tp[:, dy:dy + H] for dy in range(3)],
                               axis=-1).astype(jnp.bfloat16)

    def w_mats(wt):
        # w3[dx, dy*Cin + c, co] = wt[dy, dx, c, co]  (bf16)
        cin = wt.shape[2]
        return jnp.transpose(wt, (1, 0, 2, 3)).reshape(3, 3 * cin,
                                                       Cout).astype(jnp.bfloat16)

    xr = row_triple(x)
    w3 = w_mats(w)
    has_x2 = x2 is not None
    if has_x2:
        K3b = 3 * x2.shape[-1]
        xr2 = row_triple(x2)
        w3b = w_mats(w2)

    # Fold conv bias (and folded eval BN) into one scale/shift epilogue.
    if bn is not None:
        scale = bn[0].astype(jnp.float32)
        shift = (bn[1] + b * bn[0]).astype(jnp.float32)
    else:
        scale = None
        shift = b.astype(jnp.float32)
    has_scale = scale is not None
    has_res = residual is not None
    out_bytes = jnp.dtype(out_dtype).itemsize

    row_bytes = Wp * K3 * 2 + W * Cout * (out_bytes + 4)    # input + out + acc
    if has_x2:
        row_bytes += Wp * K3b * 2
    if has_res:
        row_bytes += W * Cout * residual.dtype.itemsize
    if pool:
        row_bytes += (W * Cout * out_bytes) // 4 + (W * Cout * 4) // 2

    min_steps = 2 if N < 2 else 1                  # keep both v7x cores busy
    TH = _pick_tile_h(H, row_bytes, even=pool, min_steps=min_steps)
    grid = (N, H // TH)

    in_specs = [pl.BlockSpec((1, TH, Wp, K3), lambda n, i: (n, i, 0, 0)),
                _const_spec((3, K3, Cout)),
                _const_spec((1, 1, Cout))]
    args = [xr, w3, shift.reshape(1, 1, Cout)]
    if has_scale:
        in_specs.append(_const_spec((1, 1, Cout)))
        args.append(scale.reshape(1, 1, Cout))
    if has_x2:
        in_specs.append(pl.BlockSpec((1, TH, Wp, K3b), lambda n, i: (n, i, 0, 0)))
        args.append(xr2)
        in_specs.append(_const_spec((3, K3b, Cout)))
        args.append(w3b)
    if has_res:
        in_specs.append(pl.BlockSpec((1, TH, W, Cout), lambda n, i: (n, i, 0, 0)))
        args.append(residual)

    out_shapes = [jax.ShapeDtypeStruct((N, H, W, Cout), out_dtype)]
    out_specs = [pl.BlockSpec((1, TH, W, Cout), lambda n, i: (n, i, 0, 0))]
    scratch = []
    if pool:
        out_shapes.append(jax.ShapeDtypeStruct((N, H // 2, W // 2, Cout), out_dtype))
        out_specs.append(pl.BlockSpec((1, TH // 2, W // 2, Cout),
                                      lambda n, i: (n, i, 0, 0)))
        scratch.append(pltpu.VMEM((TH // 2, W, Cout), jnp.float32))

    return pl.pallas_call(
        functools.partial(_conv3x3_kernel, out_w=W, has_scale=has_scale,
                          has_x2=has_x2, has_residual=has_res, relu=relu,
                          pool=pool),
        grid=grid,
        out_shape=tuple(out_shapes) if pool else out_shapes[0],
        in_specs=in_specs,
        out_specs=tuple(out_specs) if pool else out_specs[0],
        scratch_shapes=tuple(scratch),
        compiler_params=_compiler_params(("parallel", "parallel")),
    )(*args)


def _rowwise_matmul(x2d, w2d, b, act, out_dtype):
    """Row-tiled (M,Cin)@(Cin,Cout) + bias + activation, bf16 MXU / f32 acc."""
    M, Cin = x2d.shape
    Cout = w2d.shape[-1]
    x2d = x2d.astype(jnp.bfloat16)                 # cast in wrapper: half DMA
    w2d = w2d.astype(jnp.bfloat16)
    b2 = b.reshape(1, Cout).astype(jnp.float32)

    out_bytes = jnp.dtype(out_dtype).itemsize
    row_bytes = Cin * 2 + Cout * (out_bytes + 4)
    cap = max(8, _BLOCK_BUDGET_BYTES // max(row_bytes, 1))
    tm = max(8, min((cap // 8) * 8, 8192))
    tm = min(tm, _round_up(M, 8))
    if tm >= 16 and _round_up(M, tm) // tm < 2:    # >=2 grid steps for v7x
        tm = _round_up((M + 1) // 2, 8)
    Mp = _round_up(M, tm)
    if Mp != M:
        x2d = jnp.pad(x2d, ((0, Mp - M), (0, 0)))

    y = pl.pallas_call(
        functools.partial(_matmul_act_kernel, act=act),
        grid=(Mp // tm,),
        out_shape=jax.ShapeDtypeStruct((Mp, Cout), out_dtype),
        in_specs=[pl.BlockSpec((tm, Cin), lambda i: (i, 0)),
                  _const_spec((Cin, Cout)),
                  _const_spec((1, Cout))],
        out_specs=pl.BlockSpec((tm, Cout), lambda i: (i, 0)),
        compiler_params=_compiler_params(("parallel",)),
    )(x2d, w2d, b2)
    return y if Mp == M else y[:M]


def conv1x1_act(x, w2d, b, act):
    """1x1 conv + bias + final activation ('tanh' / 'sigmoid' / 'none'), f32 out."""
    N, H, W, Cin = x.shape
    Cout = w2d.shape[-1]
    y = _rowwise_matmul(x.reshape(N * H * W, Cin), w2d, b, act, jnp.float32)
    return y.reshape(N, H, W, Cout)


def upconv2x2_relu(x, w, b):
    """ConvTranspose2d(k=2, s=2) + ReLU as one lane-dense (M, 4*Cout) matmul."""
    N, H, W, Cin = x.shape
    Cout = w.shape[-1]
    wl = jnp.transpose(w, (2, 0, 1, 3)).reshape(Cin, 4 * Cout)  # cols = (a,b,co)
    bl = jnp.tile(b, 4)
    y = _rowwise_matmul(x.reshape(N * H * W, Cin), wl, bl, "relu", jnp.bfloat16)
    # De-interleave taps: out[n, 2i+a, 2j+b, c] = y[n,i,j,(a*2+b)*Cout + c].
    y = y.reshape(N, H, W, 2, 2, Cout).transpose(0, 1, 3, 2, 4, 5)
    return y.reshape(N, 2 * H, 2 * W, Cout)


def maxpool2x2(x):
    """Fallback pool (used only when the fused conv+pool epilogue is unavailable)."""
    N, H, W, C = x.shape
    return jnp.max(x.reshape(N, H // 2, 2, W // 2, 2, C), axis=(2, 4))


# ----------------------------------------------------------------------------
# Deterministic parameter init (synthetic; not a checkpoint load)
# ----------------------------------------------------------------------------
def init_conv(key, kh, kw, cin, cout):
    kw_, kb = jax.random.split(key)
    fan_in = kh * kw * cin
    w = jax.random.normal(kw_, (kh, kw, cin, cout), jnp.float32) / jnp.sqrt(fan_in)
    b = 0.01 * jax.random.normal(kb, (cout,), jnp.float32)
    return {"w": w, "b": b}


def init_bn(key, c, eps=1e-5):
    k1, k2, k3, k4 = jax.random.split(key, 4)
    gamma = 1.0 + 0.1 * jax.random.normal(k1, (c,), jnp.float32)
    beta = 0.1 * jax.random.normal(k2, (c,), jnp.float32)
    rmean = 0.1 * jax.random.normal(k3, (c,), jnp.float32)
    rvar = jnp.abs(1.0 + 0.1 * jax.random.normal(k4, (c,), jnp.float32))
    scale = gamma / jnp.sqrt(rvar + eps)
    shift = beta - rmean * scale
    return {"scale": scale, "shift": shift}


def init_down(key, cin, cout, blocks):
    keys = jax.random.split(key, 1 + 2 * blocks)
    p = {"conv1": init_conv(keys[0], 3, 3, cin, cout), "conv2": [], "bn": []}
    for i in range(blocks):
        p["conv2"].append(init_conv(keys[1 + 2 * i], 3, 3, cout, cout))
        p["bn"].append(init_bn(keys[2 + 2 * i], cout))
    return p


def init_up(key, cin, cout, blocks, concat=True):
    keys = jax.random.split(key, 2 + 2 * blocks)
    p = {"upconv": init_conv(keys[0], 2, 2, cin, cout),   # transposed-conv taps
         "conv1": init_conv(keys[1], 3, 3, 2 * cout if concat else cout, cout),
         "conv2": [], "bn": []}
    for i in range(blocks):
        p["conv2"].append(init_conv(keys[2 + 2 * i], 3, 3, cout, cout))
        p["bn"].append(init_bn(keys[3 + 2 * i], cout))
    return p


def init_encoder(key, in_channels, depth, blocks, start_filters):
    keys = jax.random.split(key, depth)
    params, outs = [], in_channels
    for i in range(depth):
        ins, outs = outs, start_filters * (2 ** i)
        params.append(init_down(keys[i], ins, outs, blocks))
    return params


def init_decoder(key, in_channels, out_channels, depth, blocks, concat=True):
    keys = jax.random.split(key, depth + 1)
    ups, outs = [], in_channels
    for i in range(depth - 1):
        ins, outs = outs, outs // 2
        ups.append(init_up(keys[i], ins, outs, blocks, concat=concat))
    return {"ups": ups, "final": init_conv(keys[depth - 1], 1, 1, outs, out_channels)}


def init_unet_baseline_d(key, in_channels=3, depth=5, shared_depth=0, blocks=1,
                         out_channels_image=3, out_channels_mask=1, start_filters=32):
    assert shared_depth == 0  # default config -> unshared_forward path
    k_enc, k_img, k_mask = jax.random.split(key, 3)
    return {
        "encoder": init_encoder(k_enc, in_channels, depth, blocks, start_filters),
        "image": init_decoder(k_img, start_filters * 2 ** (depth - shared_depth - 1),
                              out_channels_image, depth - shared_depth, blocks),
        "mask": init_decoder(k_mask, start_filters * 2 ** (depth - 1),
                             out_channels_mask, depth, blocks),
    }


# ----------------------------------------------------------------------------
# Forward pass (mirrors DownConvD / UpConvD / UnetEncoderD / UnetDecoderD)
# ----------------------------------------------------------------------------
def down_conv_forward(p, x, pooling, residual=True, batch_norm=True):
    n_blocks = len(p["conv2"])
    fuse_pool = (pooling and x.shape[1] % 2 == 0 and x.shape[2] % 2 == 0
                 and _pool_fusion_supported())

    c1_pool = fuse_pool and n_blocks == 0
    r1 = conv3x3_fused(x, p["conv1"]["w"], p["conv1"]["b"], relu=True, pool=c1_pool)
    if c1_pool:
        x1, pooled = r1
    else:
        x1, pooled = r1, None

    for bi, (conv_p, bn_p) in enumerate(zip(p["conv2"], p["bn"])):
        do_pool = fuse_pool and (bi == n_blocks - 1)
        bn = (bn_p["scale"], bn_p["shift"]) if batch_norm else None
        r = conv3x3_fused(x1, conv_p["w"], conv_p["b"], bn=bn,
                          residual=(x1 if residual else None), relu=True,
                          pool=do_pool)
        if do_pool:
            x1, pooled = r
        else:
            x1 = r

    before_pool = x1
    if pooling:
        x_out = pooled if pooled is not None else maxpool2x2(x1)
    else:
        x_out = x1
    return x_out, before_pool


def up_conv_forward(p, from_up, from_down, residual=True, batch_norm=True, concat=True):
    from_up = upconv2x2_relu(from_up, p["upconv"]["w"], p["upconv"]["b"])
    w1 = p["conv1"]["w"]
    if concat and from_down is not None:
        # Skip-concat elimination: conv1's weight is split along Cin and both
        # inputs accumulate into the same f32 acc -> no (N,H,W,2C) HBM tensor.
        c_up = from_up.shape[-1]
        x1 = conv3x3_fused(from_up, w1[:, :, :c_up, :], p["conv1"]["b"],
                           x2=from_down, w2=w1[:, :, c_up:, :], relu=True)
    else:
        base = from_up + from_down if from_down is not None else from_up
        x1 = conv3x3_fused(base, w1, p["conv1"]["b"], relu=True)
    for conv_p, bn_p in zip(p["conv2"], p["bn"]):
        bn = (bn_p["scale"], bn_p["shift"]) if batch_norm else None
        x1 = conv3x3_fused(x1, conv_p["w"], conv_p["b"], bn=bn,
                           residual=(x1 if residual else None), relu=True)
    return x1


def encoder_forward(params, x):
    depth = len(params)
    encoder_outs = []
    for i, p in enumerate(params):
        x, before_pool = down_conv_forward(p, x, pooling=(i < depth - 1))
        encoder_outs.append(before_pool)
    return x, encoder_outs


def decoder_forward(p, x, encoder_outs, final_act, concat=True):
    for i, up in enumerate(p["ups"]):
        before_pool = encoder_outs[-(i + 2)] if encoder_outs is not None else None
        x = up_conv_forward(up, x, before_pool, concat=concat)
    w = p["final"]["w"]
    return conv1x1_act(x, w.reshape(w.shape[2], w.shape[3]), p["final"]["b"], final_act)


def unet_baseline_d_forward(params, synthesized_nchw, transfer_data=True):
    # PyTorch input is NCHW -> NHWC internally -> NCHW outputs.
    x = jnp.transpose(synthesized_nchw, (0, 2, 3, 1))
    image_code, before_pool = encoder_forward(params["encoder"], x)
    if not transfer_data:
        before_pool = None
    rec_image = decoder_forward(params["image"], image_code, before_pool, "tanh")
    rec_mask = decoder_forward(params["mask"], image_code, before_pool, "sigmoid")
    return (jnp.transpose(rec_image, (0, 3, 1, 2)),
            jnp.transpose(rec_mask, (0, 3, 1, 2)))


# ----------------------------------------------------------------------------
# Self-checks of the Pallas kernels against independent jnp/lax math
# (tolerances account for bf16 MXU operands, f32 acc, bf16 activations)
# ----------------------------------------------------------------------------
def _check_primitives(key):
    k1, k2, k3, k4, k5 = jax.random.split(key, 5)
    x = jax.random.normal(k1, (2, 8, 8, 4), jnp.float32)
    cp = init_conv(k2, 3, 3, 4, 6)
    bn = init_bn(k3, 6)
    res = jax.random.normal(k4, (2, 8, 8, 6), jnp.float32)
    tol = dict(atol=7e-2, rtol=7e-2)

    def conv_ref(inp, wt):
        return jax.lax.conv_general_dilated(inp, wt, (1, 1), "SAME",
                                            dimension_numbers=("NHWC", "HWIO", "NHWC"))

    # conv3x3 + bias + relu (no BN / residual)
    got = conv3x3_fused(x, cp["w"], cp["b"], relu=True).astype(jnp.float32)
    ref0 = conv_ref(x, cp["w"])
    ref_plain = jnp.maximum(ref0 + cp["b"], 0.0)
    assert jnp.allclose(got, ref_plain, **tol)

    # conv3x3 + bias + BN + residual + relu
    got = conv3x3_fused(x, cp["w"], cp["b"], bn=(bn["scale"], bn["shift"]),
                        residual=res, relu=True).astype(jnp.float32)
    ref = jnp.maximum((ref0 + cp["b"]) * bn["scale"] + bn["shift"] + res, 0.0)
    assert jnp.allclose(got, ref, **tol)

    # fused conv + 2x2 maxpool epilogue (when the strided-pool path lowers)
    if _pool_fusion_supported():
        bp, pooled = conv3x3_fused(x, cp["w"], cp["b"], relu=True, pool=True)
        assert jnp.allclose(bp.astype(jnp.float32), ref_plain, **tol)
        ref_pl = jnp.max(ref_plain.reshape(2, 4, 2, 4, 2, 6), axis=(2, 4))
        assert jnp.allclose(pooled.astype(jnp.float32), ref_pl, **tol)

    # dual-input (split-K skip) conv vs concat reference
    x2 = jax.random.normal(k5, (2, 8, 8, 5), jnp.float32)
    cpc = init_conv(k3, 3, 3, 9, 6)
    got = conv3x3_fused(x, cpc["w"][:, :, :4, :], cpc["b"],
                        x2=x2, w2=cpc["w"][:, :, 4:, :], relu=True).astype(jnp.float32)
    ref = jnp.maximum(conv_ref(jnp.concatenate([x, x2], -1), cpc["w"]) + cpc["b"], 0.0)
    assert jnp.allclose(got, ref, **tol)

    # transposed conv 2x2 stride 2 + relu
    up = init_conv(k2, 2, 2, 4, 6)
    got = upconv2x2_relu(x, up["w"], up["b"]).astype(jnp.float32)
    ref = jnp.einsum("nijc,abco->niajbo", x, up["w"]) + up["b"]
    ref = jnp.maximum(ref, 0.0).reshape(2, 16, 16, 6)
    assert jnp.allclose(got, ref, **tol)

    # 1x1 conv + tanh
    cp1 = init_conv(k3, 1, 1, 4, 3)
    got = conv1x1_act(x, cp1["w"].reshape(4, 3), cp1["b"], "tanh")
    ref = jnp.tanh(jnp.einsum("nhwc,co->nhwo", x, cp1["w"].reshape(4, 3)) + cp1["b"])
    assert jnp.allclose(got, ref, **tol)

    # fallback maxpool 2x2
    got = maxpool2x2(x)
    ref = jnp.maximum(jnp.maximum(x[:, 0::2, 0::2], x[:, 0::2, 1::2]),
                      jnp.maximum(x[:, 1::2, 0::2], x[:, 1::2, 1::2]))
    assert jnp.allclose(got, ref)


if __name__ == "__main__":
    key = jax.random.PRNGKey(0)
    _check_primitives(key)

    # Small, consistent config: depth=3, start_filters=8, in_channels=3.
    DEPTH, START_FILTERS, IN_CH = 3, 8, 3
    k_param, k_in = jax.random.split(key)
    params = init_unet_baseline_d(k_param, in_channels=IN_CH, depth=DEPTH,
                                  shared_depth=0, blocks=1,
                                  out_channels_image=3, out_channels_mask=1,
                                  start_filters=START_FILTERS)

    x = jax.random.normal(k_in, (2, IN_CH, 16, 16), jnp.float32)  # NCHW like PyTorch
    forward = jax.jit(lambda inp: unet_baseline_d_forward(params, inp))
    rec_image, rec_mask = forward(x)
    jax.block_until_ready((rec_image, rec_mask))

    assert rec_image.shape == (2, 3, 16, 16) and rec_mask.shape == (2, 1, 16, 16)
    assert bool(jnp.all(jnp.isfinite(rec_image))) and bool(jnp.all(jnp.isfinite(rec_mask)))
    assert bool(jnp.all((rec_mask >= 0.0) & (rec_mask <= 1.0)))
    assert bool(jnp.all((rec_image >= -1.0) & (rec_image <= 1.0)))
    print("KERNEL_OK")
</pallas_src>

<mosaic_0001>
module attributes {stable_mosaic.version = 11 : i64} {
  func.func @k(%arg0: i32, %arg1: memref<8x128xf32, #tpu.memory_space<vmem>>, %arg2: memref<8x128xf32, #tpu.memory_space<vmem>>, %arg3: memref<8x128xf32, #tpu.memory_space<vmem>>) attributes {dimension_semantics = [#tpu.dimension_semantics<arbitrary>], iteration_bounds = array<i64: 2>, scalar_prefetch = 0 : i64, scratch_operands = 0 : i64, tpu.core_type = #tpu.core_type<tc>, window_params = [{transform_indices = @transform_0, window_bounds = array<i64: 8, 128>}, {pipeline_mode = #tpu.pipeline_mode<synchronous>, transform_indices = @transform_1, window_bounds = array<i64: 8, 128>}, {transform_indices = @transform_2, window_bounds = array<i64: 8, 128>}]} {
    %c0 = arith.constant 0 : index
    %c0_0 = arith.constant 0 : index
    %0 = vector.load %arg1[%c0, %c0_0] : memref<8x128xf32, #tpu.memory_space<vmem>>, vector<8x128xf32>
    %c0_1 = arith.constant 0 : index
    %c0_2 = arith.constant 0 : index
    %1 = vector.load %arg2[%c0_1, %c0_2] : memref<8x128xf32, #tpu.memory_space<vmem>>, vector<8x128xf32>
    %2 = arith.addf %0, %1 : vector<8x128xf32>
    %c0_3 = arith.constant 0 : index
    %c0_4 = arith.constant 0 : index
    %3 = vector.load %arg3[%c0_3, %c0_4] : memref<8x128xf32, #tpu.memory_space<vmem>>, vector<8x128xf32>
    tpu.vector_store %arg3[%c0_3, %c0_4], %2 {strides = array<i32>} : memref<8x128xf32, #tpu.memory_space<vmem>>, vector<8x128xf32>,
    return
  }
  func.func @transform_0(%arg0: i32) -> (i32, i32) {
    %c0_i32 = arith.constant 0 : i32
    %c0_i32_0 = arith.constant 0 : i32
    return %arg0, %c0_i32 : i32, i32
  }
  func.func @transform_1(%arg0: i32) -> (i32, i32) {
    %c0_i32 = arith.constant 0 : i32
    %c0_i32_0 = arith.constant 0 : i32
    %c0_i32_1 = arith.constant 0 : i32
    return %c0_i32, %c0_i32_0 : i32, i32
  }
  func.func @transform_2(%arg0: i32) -> (i32, i32) {
    %c0_i32 = arith.constant 0 : i32
    %c0_i32_0 = arith.constant 0 : i32
    return %arg0, %c0_i32 : i32, i32
  }
}

module attributes {stable_mosaic.version = 11 : i64} {
  func.func @_conv3x3_kernel(%arg0: i32, %arg1: i32, %arg2: memref<1x8x10x12xbf16, #tpu.memory_space<vmem>>, %arg3: memref<3x12x6xbf16, #tpu.memory_space<vmem>>, %arg4: memref<1x1x6xf32, #tpu.memory_space<vmem>>, %arg5: memref<1x8x8x6xbf16, #tpu.memory_space<vmem>>) attributes {dimension_semantics = [#tpu.dimension_semantics<parallel>, #tpu.dimension_semantics<parallel>], iteration_bounds = array<i64: 2, 1>, scalar_prefetch = 0 : i64, scratch_operands = 0 : i64, tpu.core_type = #tpu.core_type<tc>, window_params = [{transform_indices = @transform_0, window_bounds = array<i64: 1, 8, 10, 12>}, {pipeline_mode = #tpu.pipeline_mode<synchronous>, transform_indices = @transform_1, window_bounds = array<i64: 3, 12, 6>}, {pipeline_mode = #tpu.pipeline_mode<synchronous>, transform_indices = @transform_2, window_bounds = array<i64: 1, 1, 6>}, {transform_indices = @transform_3, window_bounds = array<i64: 1, 8, 8, 6>}]} {
    %c0 = arith.constant 0 : index
    %c0_0 = arith.constant 0 : index
    %c0_1 = arith.constant 0 : index
    %c0_2 = arith.constant 0 : index
    %0 = vector.load %arg2[%c0, %c0_0, %c0_1, %c0_2] : memref<1x8x10x12xbf16, #tpu.memory_space<vmem>>, vector<1x8x8x12xbf16>
    %1 = vector.shape_cast %0 : vector<1x8x8x12xbf16> to vector<8x8x12xbf16>
    %2 = vector.shape_cast %1 : vector<8x8x12xbf16> to vector<64x12xbf16>
    %c0_3 = arith.constant 0 : index
    %c0_4 = arith.constant 0 : index
    %c0_5 = arith.constant 0 : index
    %3 = vector.load %arg3[%c0_3, %c0_4, %c0_5] : memref<3x12x6xbf16, #tpu.memory_space<vmem>>, vector<1x12x6xbf16>
    %4 = vector.shape_cast %3 : vector<1x12x6xbf16> to vector<12x6xbf16>
    %cst = arith.constant dense<0.000000e+00> : vector<64x6xf32>
    %5 = tpu.matmul %2, %4, %cst {dimension_numbers = #tpu.dot_dimension_numbers<[1], [0], [0], [1], [0, 0, 1, 1], [], []>} : vector<64x12xbf16>, vector<12x6xbf16>, vector<64x6xf32> -> vector<64x6xf32>
    %c0_6 = arith.constant 0 : index
    %c0_7 = arith.constant 0 : index
    %c1 = arith.constant 1 : index
    %c0_8 = arith.constant 0 : index
    %6 = vector.load %arg2[%c0_6, %c0_7, %c1, %c0_8] : memref<1x8x10x12xbf16, #tpu.memory_space<vmem>>, vector<1x8x8x12xbf16>
    %7 = vector.shape_cast %6 : vector<1x8x8x12xbf16> to vector<8x8x12xbf16>
    %8 = vector.shape_cast %7 : vector<8x8x12xbf16> to vector<64x12xbf16>
    %c1_9 = arith.constant 1 : index
    %c0_10 = arith.constant 0 : index
    %c0_11 = arith.constant 0 : index
    %9 = vector.load %arg3[%c1_9, %c0_10, %c0_11] : memref<3x12x6xbf16, #tpu.memory_space<vmem>>, vector<1x12x6xbf16>
    %10 = vector.shape_cast %9 : vector<1x12x6xbf16> to vector<12x6xbf16>
    %cst_12 = arith.constant dense<0.000000e+00> : vector<64x6xf32>
    %11 = tpu.matmul %8, %10, %cst_12 {dimension_numbers = #tpu.dot_dimension_numbers<[1], [0], [0], [1], [0, 0, 1, 1], [], []>} : vector<64x12xbf16>, vector<12x6xbf16>, vector<64x6xf32> -> vector<64x6xf32>
    %12 = arith.addf %5, %11 : vector<64x6xf32>
    %c0_13 = arith.constant 0 : index
    %c0_14 = arith.constant 0 : index
    %c2 = arith.constant 2 : index
    %c0_15 = arith.constant 0 : index
    %13 = vector.load %arg2[%c0_13, %c0_14, %c2, %c0_15] : memref<1x8x10x12xbf16, #tpu.memory_space<vmem>>, vector<1x8x8x12xbf16>
    %14 = vector.shape_cast %13 : vector<1x8x8x12xbf16> to vector<8x8x12xbf16>
    %15 = vector.shape_cast %14 : vector<8x8x12xbf16> to vector<64x12xbf16>
    %c2_16 = arith.constant 2 : index
    %c0_17 = arith.constant 0 : index
    %c0_18 = arith.constant 0 : index
    %16 = vector.load %arg3[%c2_16, %c0_17, %c0_18] : memref<3x12x6xbf16, #tpu.memory_space<vmem>>, vector<1x12x6xbf16>
    %17 = vector.shape_cast %16 : vector<1x12x6xbf16> to vector<12x6xbf16>
    %cst_19 = arith.constant dense<0.000000e+00> : vector<64x6xf32>
    %18 = tpu.matmul %15, %17, %cst_19 {dimension_numbers = #tpu.dot_dimension_numbers<[1], [0], [0], [1], [0, 0, 1, 1], [], []>} : vector<64x12xbf16>, vector<12x6xbf16>, vector<64x6xf32> -> vector<64x6xf32>
    %19 = arith.addf %12, %18 : vector<64x6xf32>
    %20 = vector.shape_cast %19 : vector<64x6xf32> to vector<8x8x6xf32>
    %c0_20 = arith.constant 0 : index
    %c0_21 = arith.constant 0 : index
    %c0_22 = arith.constant 0 : index
    %21 = vector.load %arg4[%c0_20, %c0_21, %c0_22] : memref<1x1x6xf32, #tpu.memory_space<vmem>>, vector<1x1x6xf32>
    %22 = vector.broadcast %21 : vector<1x1x6xf32> to vector<8x8x6xf32>
    %23 = arith.addf %20, %22 : vector<8x8x6xf32>
    %cst_23 = arith.constant 0.000000e+00 : f32
    %24 = vector.broadcast %cst_23 : f32 to vector<8x8x6xf32>
    %25 = arith.maximumf %23, %24 : vector<8x8x6xf32>
    %26 = arith.truncf %25 : vector<8x8x6xf32> to vector<8x8x6xbf16>
    %c0_24 = arith.constant 0 : index
    %c0_25 = arith.constant 0 : index
    %c0_26 = arith.constant 0 : index
    %c0_27 = arith.constant 0 : index
    %27 = vector.load %arg5[%c0_24, %c0_25, %c0_26, %c0_27] : memref<1x8x8x6xbf16, #tpu.memory_space<vmem>>, vector<1x8x8x6xbf16>
    %28 = vector.shape_cast %27 : vector<1x8x8x6xbf16> to vector<8x8x6xbf16>
    %29 = vector.shape_cast %26 : vector<8x8x6xbf16> to vector<1x8x8x6xbf16>
    tpu.vector_store %arg5[%c0_24, %c0_25, %c0_26, %c0_27], %29 {strides = array<i32>} : memref<1x8x8x6xbf16, #tpu.memory_space<vmem>>, vector<1x8x8x6xbf16>,
    return
  }
  func.func @transform_0(%arg0: i32, %arg1: i32) -> (i32, i32, i32, i32) {
    %c0_i32 = arith.constant 0 : i32
    %c0_i32_0 = arith.constant 0 : i32
    %c0_i32_1 = arith.constant 0 : i32
    return %arg0, %arg1, %c0_i32, %c0_i32_0 : i32, i32, i32, i32
  }
  func.func @transform_1(%arg0: i32, %arg1: i32) -> (i32, i32, i32) {
    %c0_i32 = arith.constant 0 : i32
    %c0_i32_0 = arith.constant 0 : i32
    %c0_i32_1 = arith.constant 0 : i32
    %c0_i32_2 = arith.constant 0 : i32
    return %c0_i32, %c0_i32_0, %c0_i32_1 : i32, i32, i32
  }
  func.func @transform_2(%arg0: i32, %arg1: i32) -> (i32, i32, i32) {
    %c0_i32 = arith.constant 0 : i32
    %c0_i32_0 = arith.constant 0 : i32
    %c0_i32_1 = arith.constant 0 : i32
    %c0_i32_2 = arith.constant 0 : i32
    return %c0_i32, %c0_i32_0, %c0_i32_1 : i32, i32, i32
  }
  func.func @transform_3(%arg0: i32, %arg1: i32) -> (i32, i32, i32, i32) {
    %c0_i32 = arith.constant 0 : i32
    %c0_i32_0 = arith.constant 0 : i32
    %c0_i32_1 = arith.constant 0 : i32
    return %arg0, %arg1, %c0_i32, %c0_i32_0 : i32, i32, i32, i32
  }
}

</mosaic_0001>

<bundles_post_ra>
// kernel: tpu_custom_call.1
= control target key start
LH: loop header
LB: loop body
LE: loop exit
PB: predicated region body
PF: predicated region fallthrough
CT: control target
= control target key end

     0   :  { %7 = vsyncpa [#allocation3], 0  ;;  %s690_s0 = inlined_call_operand.hbm [shape: f32[16,128], index: 0, kind: input, shape index: {}]   ;;  %s691_s1 = inlined_call_operand.hbm [shape: f32[8,128], index: 1, kind: input, shape index: {}]   ;;  %s692_s2 = inlined_call_operand.hbm [shape: f32[16,128], index: 2, kind: output, shape index: {}]  }
   0x1   :  { %9 = vsyncpa [#allocation3 + $0x1], 0 }
   0x2   :  { %10 = vsyncpa [#allocation6], 0 }
   0x3   :  { %11 = vsyncpa [#allocation4], 0 }
   0x4   :  { %13 = vsyncpa [#allocation4 + $0x1], 0  ;;  %s489_s9 = smov 0   ;;  %s491_s10 = smov 0  }
   0x5   :  { %s493_s11 = smov 0   ;;  %s495_s12 = smov 0  }
   0x6 LB: > { %s510_s13 = sadd.s32 4294967295, %s469_s12   ;;  %s270_s14 = sadd.s32 4294967294, %s469_s12   ;;  %s469_s12 = sphi %s495_s12, %s716_s12   ;;  %s465_s11 = sphi %s493_s11, %s715_s11   ;;  %s461_s10 = sphi %s491_s10, %s714_s10   ;;  %s457_s9 = sphi %s489_s9, %s713_s9  }
   0x7   : > { %p39_p0 = scmp.ne.s32.totalorder %s461_s10, %s457_s9  ;;  %p693_p1 = scmp.eq.s32.totalorder %s510_s13, 0 }
   0x8   : > { %p90_p3 = scmp.eq.s32.totalorder %s270_s14, 1  ;;  %p271_p5 = scmp.ge.s32.totalorder %s469_s12, 1 }
   0x9   : > { %p519_p4 = por %p693_p1, %p39_p0  ;;  %p97_p7 = scmp.lt.s32.totalorder %s469_s12, 3 }
   0xa   : > { %p524_p6 = por %p90_p3, %p39_p0  ;;  %s471_s18 = smov [#allocation5]  }
   0xb   : > { %s696_s15 = scalar_select %p519_p4, 1, 0 }
   0xc   : > { %s697_s16 = scalar_select %p524_p6, 1, 0 }
   0xd   : > { %p529_p8 = pnand %p271_p5, %p97_p7  ;;  %s110_s19 = sshll.u32 %s471_s18, 4  ;;  %s111_s19 = int_to_ptr.vmem [resolvable:$true] %s110_s19 }
   0xe   : > { %s537_s20 = sadd.s32 1, %s469_s12   ;;  %s26_s24 = sadd.s32 1, %s465_s11 }
   0xf   : > { %s698_s17 = scalar_select %p529_p8, 1, 0 }
  0x10   : > { %p292_p10 = pneg %p529_p8  ;;  %s23_s22 = ssub.s32 %s469_s12, %s537_s20 }
  0x11   : > { %p547_p12 = scmp.eq.s32.totalorder %s23_s22, 0  ;;  %s341_s27 = scalar_lea.hbm %s691_s1, 128 }
  0x12   : > { %p541_p11 = pnand %p292_p10, %p693_p1  ;;  %p342_p0 = scmp.ne.s32.totalorder %s691_s1, %s341_s27 }
  0x13   : > { %s700_s23 = scalar_select %p547_p12, 1, 0 }
  0x14   : > { %p343_p3 = pneg %p541_p11  ;;  %p348_p10 = scmp.lt.u32.totalorder %s341_s27, %s691_s1 }
  0x16   : > { %p344_p5 = pnand %p343_p3, %p342_p0 }
  0x18   : > { %p345_p7 = pneg %p344_p5 }
  0x1a   : > { %p350_p9 = pnand %p348_p10, %p345_p7 }
  0x1c   : > { %353 = shalt.err (!%p350_p9)
}
  0x1d   : > { %s354_s4 = scalar_lea.vmem %s111_s19, 128  ;;  %p362_p6 = scmp.lt.s32.totalorder %s111_s19, %s111_s19 }
  0x1e   : > { %p355_p1 = scmp.ne.s32.totalorder %s111_s19, %s354_s4  ;;  %p363_p4 = scmp.lt.s32.totalorder %s354_s4, %s354_s4 }
  0x20   : > { %p357_p2 = pnand %p355_p1, %p343_p3  ;;  %p364_p8 = por %p363_p4, %p362_p6 }
  0x22   : > { %p358_p13 = pneg %p357_p2 }
  0x24   : > { %p365_p12 = pnand %p364_p8, %p358_p13 }
  0x26   : > { %368 = shalt.err (!%p365_p12)
}
  0x27   : > { %295 = dma.hbm_to_vmem [thread:$0]  (!%p541_p11), %s691_s1, 128, %s111_s19, [#allocation6]  }
  0x28   : > { %p701_p1 = scmp.ne.s32.totalorder %s700_s23, 0  ;;  %p34_p2 = scmp.eq.s32.totalorder %s469_s12, 0 }
  0x29   : > { %p702_p4 = scmp.ne.s32.totalorder %s465_s11, %s461_s10  ;;  %p703_p6 = scmp.eq.s32.totalorder %s510_s13, 1 }
  0x2a   : > { %s573_s7 = scalar_select %p701_p1, %s465_s11, %s26_s24  }
  0x2b   : > { %p581_p8 = por %p703_p6, %p702_p4  ;;  %p305_p9 = scmp.lt.s32.totalorder %s469_s12, 2 }
  0x2c   : > { %s121_s14 = sand.u32 1, %s465_s11   ;;  %p705_p12 = pmov %p702_p4 }
  0x2d   : > { %s274_s18 = sshll.u32 %s121_s14, 3  ;;  %s275_s21 = sshll.u32 %s469_s12, 7 }
  0x2e   : > { %p35_p13 = por %p34_p2, %p705_p12  ;;  %s594_s19 = scalar_lea.hbm %s690_s0, %s275_s21 }
  0x2f   : > { %s125_s23 = scalar_lea.vmem [#allocation2], %s274_s18  ;;  %s122_s27 = scalar_lea.sflag [#allocation3], %s121_s14 }
  0x30   : > { %s132_s24 = sshll.u32 %s125_s23, 4  ;;  %p596_p11 = pnand %p305_p9, %p35_p13  ;;  %s600_s24 = int_to_ptr.vmem [resolvable:$true] %s132_s24 }
  0x31   : > { %s369_s28 = scalar_lea.hbm %s594_s19, 128  ;;  %s374_s3 = scalar_lea.hbm %s690_s0, 256 }
  0x32   : > { %p370_p0 = scmp.ne.s32.totalorder %s594_s19, %s369_s28  ;;  %p371_p3 = pneg %p596_p11 }
  0x33   : > { %p375_p10 = scmp.lt.u32.totalorder %s594_s19, %s690_s0  ;;  %p376_p1 = scmp.lt.u32.totalorder %s374_s3, %s369_s28 }
  0x34   : > { %p372_p5 = pnand %p371_p3, %p370_p0  ;;  %p378_p4 = scmp.lt.u32.totalorder %s369_s28, %s594_s19 }
  0x35   : > { %p377_p2 = por %p376_p1, %p375_p10 }
  0x36   : > { %p373_p7 = pneg %p372_p5 }
  0x37   : > { %p379_p6 = por %p378_p4, %p377_p2 }
  0x39   : > { %p380_p9 = pnand %p379_p6, %p373_p7 }
  0x3b   : > { %383 = shalt.err (!%p380_p9)
}
  0x3c   : > { %s384_s6 = scalar_lea.vmem %s600_s24, 128  ;;  %s472_s14 = smov [#allocation2]  }
  0x3d   : > { %p385_p12 = scmp.ne.s32.totalorder %s600_s24, %s384_s6  ;;  %s389_s18 = sshll.u32 %s472_s14, 4  ;;  %s390_s18 = int_to_ptr.vmem [resolvable:$false] %s389_s18 }
  0x3e   : > { %s391_s21 = scalar_lea.vmem %s390_s18, 256  ;;  %p392_p5 = scmp.lt.s32.totalorder %s600_s24, %s390_s18 }
  0x3f   : > { %p387_p13 = pnand %p385_p12, %p371_p3  ;;  %p393_p10 = scmp.lt.s32.totalorder %s391_s21, %s384_s6 }
  0x41   : > { %p388_p0 = pneg %p387_p13  ;;  %p394_p1 = por %p393_p10, %p392_p5 }
  0x43   : > { %p395_p2 = pnand %p394_p1, %p388_p0 }
  0x45   : > { %398 = shalt.err (!%p395_p2)
}
  0x46   : > { %299 = dma.hbm_to_vmem [thread:$0]  (!%p596_p11), %s594_s19, 128, %s600_s24, %s122_s27  }
  0x47   : > { %p707_p7 = scmp.ne.s32.totalorder %s698_s17, 0 }
  0x48   : > { %s630_s22 = sand.u32 (!%p707_p7), 1, %s461_s10   ;;  %p708_p3 = scmp.ne.s32.totalorder (!%p707_p7), %s696_s15, 0 }
  0x49   : > { %141 = sbr.rel (%p707_p7) target bundleno = 109 (0x6d), region = 28  ;;  %s277_s25 = sshll.u32 (!%p707_p7), %s630_s22, 3 }
  0x4a   : > { %s144_s23 = scalar_lea.sflag (!%p707_p7), [#allocation3], %s630_s22  ;;  %s147_s28 = scalar_lea.vmem (!%p707_p7), [#allocation2], %s277_s25 }
  0x50   : > { %444 = dma.done.wait (%p708_p3), %s144_s23, 128  }
  0x51   : > { %446 = vsyncadd (%p708_p3), %s144_s23, 4294967168  ;;  %p709_p4 = scmp.eq.s32.totalorder %s510_s13, 0 }
  0x53   : > { %448 = dma.done.wait (%p709_p4), [#allocation6], 128   ;;  %p710_p11 = pmov %p709_p4 }
  0x54   : > { %s171_s17 = scalar_lea.vmem [#allocation7], %s277_s25  ;;  %s281_s24 = sshll.u32 %s510_s13, 7  ;;  %v172_v0 = vld [vmem:[%s147_s28] sm:$0xff]  ;;  %v173_v1 = vld [vmem:[#allocation5] sm:$0xff] }
  0x55   : > { %450 = vsyncadd (%p710_p11), [#allocation6], 4294967168  ;;  %s190_s19 = sshll.u32 %s171_s17, 4  ;;  %v174_v2 = vadd.f32 %v173_v1, %v172_v0  ;;  %s648_s27 = scalar_lea.hbm %s692_s2, %s281_s24  ;;  %s643_s19 = int_to_ptr.vmem [resolvable:$true] %s190_s19 }
  0x56   : > { %s177_s29 = scalar_lea.sflag [#allocation4], %s630_s22  ;;  %s399_s30 = scalar_lea.vmem %s643_s19, 128 }
  0x57   : > { %175 = vst [vmem:[%s171_s17] sm:$0xff] %v174_v2  ;;  %p400_p6 = scmp.ne.s32.totalorder %s643_s19, %s399_s30  ;;  %s473_s13 = smov [#allocation7]  }
  0x58   : > { %s403_s3 = sshll.u32 %s473_s13, 4  ;;  %s404_s3 = int_to_ptr.vmem [resolvable:$false] %s403_s3 }
  0x59   : > { %p401_p9 = pnand %p400_p6, %p581_p8  ;;  %s405_s4 = scalar_lea.vmem %s404_s3, 256 }
  0x5a   : > { %p406_p13 = scmp.lt.s32.totalorder %s643_s19, %s404_s3  ;;  %p407_p0 = scmp.lt.s32.totalorder %s405_s4, %s399_s30 }
  0x5b   : > { %p402_p12 = pneg %p401_p9 }
  0x5c   : > { %p408_p5 = por %p407_p0, %p406_p13 }
  0x5e   : > { %p409_p10 = pnand %p408_p5, %p402_p12 }
  0x60   : > { %412 = shalt.err (!%p409_p10)
}
  0x61   : > { %s413_s5 = scalar_lea.hbm %s648_s27, 128  ;;  %s417_s18 = scalar_lea.hbm %s692_s2, 256 }
  0x62   : > { %p414_p1 = scmp.ne.s32.totalorder %s648_s27, %s413_s5  ;;  %p418_p3 = scmp.lt.u32.totalorder %s648_s27, %s692_s2 }
  0x63   : > { %p419_p4 = scmp.lt.u32.totalorder %s417_s18, %s413_s5  ;;  %p421_p6 = scmp.lt.u32.totalorder %s413_s5, %s648_s27 }
  0x64   : > { %p415_p2 = pnand %p414_p1, %p581_p8 }
  0x65   : > { %p420_p11 = por %p419_p4, %p418_p3 }
  0x66   : > { %p416_p7 = pneg %p415_p2 }
  0x67   : > { %p422_p9 = por %p421_p6, %p420_p11 }
  0x69   : > { %p423_p12 = pnand %p422_p9, %p416_p7 }
  0x6b   : > { %426 = shalt.err (!%p423_p12)
}
  0x6c   : > { %290 = dma.vmem_to_hbm [thread:$0]  (%p581_p8), %s643_s19, 128, %s648_s27, %s177_s29  }
  0x6d PF: > { %s202_s25 = sand.u32 1, %s457_s9   ;;  %p711_p13 = scmp.ne.s32.totalorder %s697_s16, 0 }
  0x6e   : > { %p712_p0 = scmp.ge.s32.totalorder %s469_s12, 2  ;;  %s203_s23 = scalar_lea.sflag [#allocation4], %s202_s25 }
  0x70   : > { %p301_p5 = pnand %p712_p0, %p711_p13 }
  0x72   : > { %452 = dma.done.wait (!%p301_p5), %s203_s23, 128  }
  0x73   : > { %454 = vsyncadd (!%p301_p5), %s203_s23, 4294967168  ;;  %p16_p10 = scmp.ge.s32.totalorder %s537_s20, 4   ;;  %s713_s9 = smov %s461_s10 }
  0x74   : > { %s714_s10 = smov %s465_s11  ;;  %s715_s11 = smov %s573_s7 }
  0x75   : > { %s716_s12 = smov %s537_s20  ;;  %18 = sbr.rel (!%p16_p10) target bundleno = 6 (0x6), region = 77 }
  0x7c   :  { %208 = vsyncpa [#allocation3], 1 }
  0x7d   :  { %210 = vsyncpa [#allocation3 + $0x1], 1 }
  0x7e   :  { %211 = vsyncpa [#allocation6], 1 }
  0x7f   :  { %212 = vsyncpa [#allocation4], 1 }
  0x80   :  { %214 = vsyncpa [#allocation4 + $0x1], 1 }

// kernel: tpu_custom_call.1
= control target key start
LH: loop header
LB: loop body
LE: loop exit
PB: predicated region body
PF: predicated region fallthrough
CT: control target
= control target key end

     0   :  { %s1046_s12 = smov 0   ;;  %s1048_s13 = smov 0   ;;  %s1234_s0 = inlined_call_operand.vmem [shape: bf16[2,8,10,12], index: 0, kind: input, shape index: {}]   ;;  %s1235_s1 = inlined_call_operand.vmem [shape: bf16[3,12,6], index: 1, kind: input, shape index: {}]   ;;  %s1236_s2 = inlined_call_operand.vmem [shape: f32[1,1,6], index: 2, kind: input, shape index: {}]   ;;  %s1237_s3 = inlined_call_operand.vmem [shape: bf16[2,8,8,6], index: 3, kind: output, shape index: {}]  }
   0x1   :  { %s1050_s14 = smov 0  }
   0x2 LB: > { %s25_s15 = sadd.s32 1, %s1020_s13  ;;  %p855_p0 = scmp.ge.s32.totalorder %s1024_s14, 1  ;;  %s1024_s14 = sphi %s1050_s14, %s13_s14   ;;  %s1020_s13 = sphi %s1048_s13, %s1243_s13   ;;  %s1016_s12 = sphi %s1046_s12, %s1242_s12  }
   0x3   : > { %p27_p1 = scmp.ge.s32.totalorder %s25_s15, 2  ;;  %p159_p2 = scmp.lt.s32.totalorder %s1024_s14, 3 }
   0x5   : > { %s1245_s15 = smov (%p27_p1, %s25_s15), 0  ;;  %p160_p3 = pnand %p855_p0, %p159_p2 }
   0x6   : > { %vm380_vm0 = vcmask (!%p160_p3), 1045504   ;;  %p193_p4 = scmp.lt.s32.totalorder (!%p160_p3), %s1016_s12, 1  ;;  %v995_v0 = vld [vmem:[%s1235_s1] sm:$0x3f] (!%p160_p3)   ;;  %v998_v1 = vld [vmem:[%s1235_s1 + $0x8] sm:$0x3f] (!%p160_p3)  }
   0x7   : > { %163 = sbr.rel (%p160_p3) target bundleno = 283 (0x11b), region = 32  ;;  %968 = vmatprep.subr.msk.bf16.mxu0 (!%p160_p3), %vm380_vm0, %v995_v0  ;;  %v1074_v2 = vsel (!%p160_p3), %vm380_vm0, %v995_v0, 0  ;;  %vm367_vm1 = vcmask (!%p160_p3), 97280   ;;  %967 = vmatprep.subr.msk.bf16.mxu1 (!%p160_p3), %vm380_vm0, %v998_v1  ;;  %v382_v3 = vsel (!%p160_p3), %vm380_vm0, %v998_v1, 0  ;;  %vm232_vm2 = vsmask.f32 (!%p160_p3), 3328 }
   0x8   : > { %930 = vmatpush3.bf16.msra.mxu0 (!%p160_p3), %v1074_v2  ;;  %920 = vmatpush3.bf16.msra.mxu1 (!%p160_p3), %v382_v3  ;;  %vm233_vm3 = vsmask.f32 (!%p160_p3), 7440  ;;  %v1088_v4 = vld [vmem:[%s1235_s1 + $0x10] sm:$0x3f] (!%p160_p3)   ;;  %vm578_vm4 = vcmask (!%p160_p3), 1042432   ;;  %vm579_vm5 = vcmask (!%p160_p3), 1046532  }
   0x9   : > { %969 = vmatprep.subr.msk.bf16.mxu1 (!%p160_p3), %vm380_vm0, %v995_v0  ;;  %970 = vmatprep.subr.msk.bf16.mxu0 (!%p160_p3), %vm380_vm0, %v1088_v4  ;;  %vm1104_vm6 = vmor (!%p160_p3), %vm232_vm2, %vm233_vm3  ;;  %v646_v61 = vsel (!%p160_p3), %vm380_vm0, %v1088_v4, 0  ;;  %v899_v58 = vld [vmem:[%s1236_s2] ss:$0 sm:$0xff] (!%p160_p3)  ;;  %vm752_vm8 = vcmask (!%p160_p3), 44032  }
   0xa   : > { %vm1119_vm7 = vmor (!%p160_p3), %vm578_vm4, %vm579_vm5 }
   0xe   : > { %s1247_s12 = smov (!%p193_p4, %s1016_s12), 1 }
   0xf   : > { %s902_s20 = sshll.u32 %s1247_s12, 6  ;;  %s903_s28 = sshll.u32 %s1247_s12, 5 }
  0x10   : > { %s1083_s23 = scalar_lea.vmem %s1234_s0, %s902_s20  ;;  %s1207_s4 = scalar_lea.vmem %s1237_s3, %s903_s28 }
  0x11   : > { %v214_v5 = vld [vmem:[%s1083_s23] sm:$0xf]  ;;  %v215_v6 = vld [vmem:[%s1083_s23 + $0x8] sm:$0xf]  ;;  %v216_v7 = vld [vmem:[%s1083_s23 + $0x10] sm:$0xf] }
  0x12   : > { %v236_v8 = vshrl.u32 %v214_v5, 16  ;;  %v239_v9 = vshll.u32 %v214_v5, 16  ;;  %v250_v10 = vshrl.u32 %v215_v6, 16  ;;  %v253_v11 = vshll.u32 %v215_v6, 16  ;;  %v217_v12 = vld [vmem:[%s1083_s23 + $0x18] sm:$0xf] }
  0x13   : > { %v871_v13 = vcombine.low %v214_v5, %v215_v6  ;;  %v264_v14 = vshrl.u32 %v216_v7, 16  ;;  %v267_v15 = vshll.u32 %v216_v7, 16  ;;  %v278_v16 = vshrl.u32 %v217_v12, 16  ;;  %v224_v17 = vld [vmem:[%s1083_s23 + $0x4] sm:$0x1] }
  0x14   : > { %v238_v18 = vrot.slane %v236_v8, 4  ;;  %v241_v19 = vrot.slane %v239_v9, 5  ;;  %v252_v20 = vrot.slane %v250_v10, 4  ;;  %v255_v21 = vrot.slane %v253_v11, 5  ;;  %v225_v22 = vld [vmem:[%s1083_s23 + $0xc] sm:$0x1] }
  0x15   : > { %931 = vmatprep.mubr.msk.bf16.mxu0 %vm367_vm1, %v871_v13  ;;  %v266_v23 = vrot.slane %v264_v14, 4  ;;  %v269_v24 = vrot.slane %v267_v15, 5  ;;  %v280_v25 = vrot.slane %v278_v16, 4  ;;  %v281_v26 = vshll.u32 %v217_v12, 16  ;;  %v226_v31 = vld [vmem:[%s1083_s23 + $0x14] sm:$0x1] }
  0x16   : > { %v872_v27 = vcombine.low %v216_v7, %v217_v12  ;;  %v242_v28 = vor.u32 %v241_v19, %v238_v18  ;;  %v245_v29 = vshll.u32 %v224_v17, 16  ;;  %v256_v30 = vor.u32 %v255_v21, %v252_v20  ;;  %v227_v32 = vld [vmem:[%s1083_s23 + $0x1c] sm:$0x1]  ;;  %v554_v38 = vld [vmem:[%s1083_s23] sm:$0xe] }
  0x17   : > { %v283_v33 = vrot.slane %v281_v26, 5  ;;  %v259_v35 = vshll.u32 %v225_v22, 16  ;;  %v583_v36 = vrot.slane %v224_v17, 5  ;;  %v587_v37 = vrot.slane %v225_v22, 5  ;;  %v555_v43 = vld [vmem:[%s1083_s23 + $0x8] sm:$0xe] }
  0x18   : > { %932 = vmatmul.mubr.msk.bf16.vlgmr.msra.gmra.mrb[0].mxu0 %vm367_vm1, %v872_v27  ;;  %v243_v39 = vrot.slane %v242_v28, 4  ;;  %v247_v40 = vrot.slane %v245_v29, 5  ;;  %v257_v41 = vrot.slane %v256_v30, 4  ;;  %v270_v42 = vor.u32 %v269_v24, %v266_v23  ;;  %v556_v48 = vld [vmem:[%s1083_s23 + $0x10] sm:$0xe] }
  0x19   : > { %v261_v44 = vrot.slane %v259_v35, 5  ;;  %v273_v45 = vshll.u32 %v226_v31, 16  ;;  %v284_v46 = vor.u32 %v283_v33, %v280_v25  ;;  %v287_v47 = vshll.u32 %v227_v32, 16  ;;  %v557_v53 = vld [vmem:[%s1083_s23 + $0x18] sm:$0xe]  ;;  %940 = vmatpush3.bf16.msra.mxu0 %v646_v61 }
  0x1a   : > { %v248_v49 = vsel %vm1104_vm6, %v243_v39, %v247_v40  ;;  %v271_v50 = vrot.slane %v270_v42, 4  ;;  %v591_v51 = vrot.slane %v226_v31, 5  ;;  %v595_v52 = vrot.slane %v227_v32, 5  ;;  %v1124_v59 = vld [vmem:[%s1083_s23 + $0x20] sm:$0xf] }
  0x1b   : > { %v262_v54 = vsel %vm1104_vm6, %v257_v41, %v261_v44  ;;  %v275_v55 = vrot.slane %v273_v45, 5  ;;  %v285_v56 = vrot.slane %v284_v46, 4  ;;  %v289_v57 = vrot.slane %v287_v47, 5  ;;  %v1133_v6 = vld [vmem:[%s1083_s23 + $0x28] sm:$0xf] }
  0x1c   : > { %v862_v60 = vcombine.low %v248_v49, %v262_v54  ;;  %v880_v62 = vrot.slane %v554_v38, 9  ;;  %v881_v63 = vrot.slane %v555_v43, 9  ;;  %v882_v3 = vrot.slane %v556_v48, 9  ;;  %v228_v7 = vld [vmem:[%s1083_s23 + $0x24] sm:$0x1] }
  0x1d   : > { %v276_v0 = vsel %vm1104_vm6, %v271_v50, %v275_v55  ;;  %v290_v1 = vsel %vm1104_vm6, %v285_v56, %v289_v57  ;;  %v883_v5 = vrot.slane %v557_v53, 9  ;;  %v1142_v10 = vld [vmem:[%s1083_s23 + $0x2c] sm:$0x1]  ;;  %v292_v11 = vshrl.u32 %v1124_v59, 16  ;;  %v1146_v12 = vld [vmem:[%s1083_s23 + $0x30] sm:$0xf] }
  0x1e   : > { %921 = vmatprep.mubr.msk.bf16.mxu1 %vm367_vm1, %v862_v60  ;;  %v863_v8 = vcombine.low %v276_v0, %v290_v1  ;;  %v584_v4 = vsel %vm1119_vm7, %v880_v62, %v583_v36  ;;  %v588_v9 = vsel %vm1119_vm7, %v881_v63, %v587_v37  ;;  %v592_v14 = vsel %vm1119_vm7, %v882_v3, %v591_v51  ;;  %v230_v17 = vld [vmem:[%s1083_s23 + $0x34] sm:$0x1]  ;;  %v1157_v22 = vld [vmem:[%s1083_s23 + $0x38] sm:$0xf]  ;;  %v231_v26 = vld [vmem:[%s1083_s23 + $0x3c] sm:$0x1] }
  0x1f   : > { %v890_v13 = vcombine.low %v584_v4, %v588_v9  ;;  %v596_v15 = vsel %vm1119_vm7, %v883_v5, %v595_v52  ;;  %v295_v16 = vshll.u32 %v1124_v59, 16  ;;  %v294_v19 = vrot.slane %v292_v11, 4  ;;  %v558_v32 = vld [vmem:[%s1083_s23 + $0x20] sm:$0xe]  ;;  %v559_v41 = vld [vmem:[%s1083_s23 + $0x28] sm:$0xe] }
  0x20   : > { %922 = vmatmul.mubr.msk.bf16.vlgmr.msra.gmra.mrb[0].mxu1 %vm367_vm1, %v863_v8  ;;  %v891_v18 = vcombine.low %v592_v14, %v596_v15  ;;  %v301_v20 = vshll.u32 %v228_v7, 16  ;;  %v306_v21 = vshrl.u32 %v1133_v6, 16  ;;  %v309_v24 = vshll.u32 %v1133_v6, 16  ;;  %v560_v46 = vld [vmem:[%s1083_s23 + $0x30] sm:$0xe] }
  0x21   : > { %950 = vmatpush3.bf16.msra.mxu1 %v1074_v2  ;;  %941 = vmatprep.mubr.msk.bf16.mxu0 %vm367_vm1, %v890_v13  ;;  %v297_v23 = vrot.slane %v295_v16, 5  ;;  %v315_v25 = vshll.u32 %v1142_v10, 16  ;;  %v320_v27 = vshrl.u32 %v1146_v12, 16  ;;  %v323_v30 = vshll.u32 %v1146_v12, 16  ;;  %v561_v51 = vld [vmem:[%s1083_s23 + $0x38] sm:$0xe] }
  0x22   : > { %v303_v28 = vrot.slane %v301_v20, 5  ;;  %v308_v29 = vrot.slane %v306_v21, 4  ;;  %v329_v31 = vshll.u32 %v230_v17, 16  ;;  %v311_v2 = vrot.slane %v309_v24, 5 }
  0x23   : > { %v298_v33 = vor.u32 %v297_v23, %v294_v19  ;;  %v317_v35 = vrot.slane %v315_v25, 5  ;;  %v322_v36 = vrot.slane %v320_v27, 4  ;;  %v325_v37 = vrot.slane %v323_v30, 5 }
  0x24   : > { %942 = vmatmul.mubr.msk.bf16.vlgmr.msra.gmra.mrb[0].mxu0 %vm367_vm1, %v891_v18  ;;  %v331_v38 = vrot.slane %v329_v31, 5  ;;  %v334_v39 = vshrl.u32 %v1157_v22, 16  ;;  %v337_v40 = vshll.u32 %v1157_v22, 16  ;;  %v312_v43 = vor.u32 %v311_v2, %v308_v29 }
  0x25   : > { %v299_v42 = vrot.slane %v298_v33, 4  ;;  %v343_v44 = vshll.u32 %v231_v26, 16  ;;  %v884_v45 = vrot.slane %v558_v32, 9  ;;  %v326_v47 = vor.u32 %v325_v37, %v322_v36 }
  0x26   : > { %v336_v48 = vrot.slane %v334_v39, 4  ;;  %v339_v49 = vrot.slane %v337_v40, 5  ;;  %v599_v50 = vrot.slane %v228_v7, 5  ;;  %v313_v53 = vrot.slane %v312_v43, 4 }
  0x27   : > { %v304_v52 = vsel %vm1104_vm6, %v299_v42, %v303_v28  ;;  %v345_v54 = vrot.slane %v343_v44, 5  ;;  %v885_v55 = vrot.slane %v559_v41, 9  ;;  %v327_v56 = vrot.slane %v326_v47, 4 }
  0x28   : > { %v340_v57 = vor.u32 %v339_v49, %v336_v48  ;;  %v600_v60 = vsel %vm1119_vm7, %v884_v45, %v599_v50  ;;  %v603_v61 = vrot.slane %v1142_v10, 5  ;;  %v318_v62 = vsel %vm1104_vm6, %v313_v53, %v317_v35 }
  0x29   : > { %v886_v63 = vrot.slane %v560_v46, 9  ;;  %v607_v0 = vrot.slane %v230_v17, 5  ;;  %v887_v1 = vrot.slane %v561_v51, 9  ;;  %v864_v3 = vcombine.low %v304_v52, %v318_v62 }
  0x2a   : > { %v332_v5 = vsel %vm1104_vm6, %v327_v56, %v331_v38  ;;  %v341_v7 = vrot.slane %v340_v57, 4  ;;  %v604_v8 = vsel %vm1119_vm7, %v885_v55, %v603_v61  ;;  %v611_v11 = vrot.slane %v231_v26, 5 }
  0x2b   : > { %v892_v4 = vcombine.low %v600_v60, %v604_v8  ;;  %v608_v9 = vsel %vm1119_vm7, %v886_v63, %v607_v0  ;;  %925 = vmatprep.mubr.msk.bf16.mxu1 %vm367_vm1, %v864_v3  ;;  %v873_v13 = vcombine.low %v1124_v59, %v1133_v6  ;;  %v874_v34 = vcombine.low %v1146_v12, %v1157_v22 }
  0x2c   : > { %v346_v10 = vsel %vm1104_vm6, %v341_v7, %v345_v54  ;;  %v612_v15 = vsel %vm1119_vm7, %v887_v1, %v611_v11 }
  0x2d   : > { %v865_v14 = vcombine.low %v332_v5, %v346_v10  ;;  %945 = vmatprep.mubr.msk.bf16.mxu0 %vm367_vm1, %v892_v4  ;;  %v893_v16 = vcombine.low %v608_v9, %v612_v15 }
  0x2f   : > { %926 = vmatmul.mubr.msk.bf16.gmra.mrb[4].mxu1 %vm367_vm1, %v865_v14  ;;  %946 = vmatmul.mubr.msk.bf16.gmra.mrb[4].mxu0 %vm367_vm1, %v893_v16 }
  0x30   : > { %935 = vmatprep.mubr.msk.bf16.mxu1 %vm367_vm1, %v873_v13 }
  0x3b   : > { %936 = vmatmul.mubr.msk.bf16.vlgmr.msra.gmra.mrb[4].mxu1 %vm367_vm1, %v874_v34 }
  0xf3   : > { %v923_v59 = vpop.f32.mrb[0].mxu1 }
  0xf4   : > { %v418_v6 = vpop.f32.mrb[1].mxu1 }
  0xf5   : > { %v924_v17 = vpop.f32.mrb[2].mxu1 }
  0xf6   : > { %v421_v18 = vpop.f32.mrb[3].mxu1 }
  0xf7   : > { %v943_v19 = vpop.f32.mrb[0].mxu0 }
  0xf8   : > { %v951_v20 = vadd.f32 %v943_v19, %v923_v59  ;;  %v682_v21 = vpop.f32.mrb[1].mxu0 }
  0xf9   : > { %v952_v23 = vadd.f32 %v682_v21, %v418_v6  ;;  %v944_v24 = vpop.f32.mrb[2].mxu0 }
  0xfa   : > { %v730_v25 = vadd.f32 %v951_v20, %v899_v58  ;;  %v953_v26 = vadd.f32 %v944_v24, %v924_v17  ;;  %v685_v27 = vpop.f32.mrb[3].mxu0 }
  0xfb   : > { %v728_v12 = vadd.f32 %v952_v23, %v899_v58  ;;  %v954_v22 = vadd.f32 %v685_v27, %v421_v18 }
  0xfc   : > { %v738_v28 = vmax.f32 %v730_v25, 0.0  ;;  %v731_v29 = vadd.f32 %v953_v26, %v899_v58 }
  0xfd   : > { %v736_v30 = vmax.f32 %v728_v12, 0.0  ;;  %v729_v31 = vadd.f32 %v954_v22, %v899_v58 }
  0xfe   : > { %v746_v32 = vpack.c.bf16 %v738_v28, %v738_v28  ;;  %v739_v33 = vmax.f32 %v731_v29, 0.0 }
  0xff   : > { %v744_v2 = vpack.c.bf16 %v736_v30, %v736_v30  ;;  %v737_v35 = vmax.f32 %v729_v31, 0.0 }
 0x100   : > { %755 = vst.msk [vmem:[%s1207_s4 + $0x8] sm:$0xf] %vm752_vm8, %v746_v32  ;;  %v747_v36 = vpack.c.bf16 %v739_v33, %v739_v33 }
 0x101   : > { %753 = vst.msk [vmem:[%s1207_s4] sm:$0xf] %vm752_vm8, %v744_v2  ;;  %v745_v37 = vpack.c.bf16 %v737_v35, %v737_v35 }
 0x102   : > { %756 = vst.msk [vmem:[%s1207_s4 + $0xc] sm:$0xf] %vm752_vm8, %v747_v36  ;;  %v947_v38 = vpop.f32.mrb[4].mxu0 }
 0x103   : > { %754 = vst.msk [vmem:[%s1207_s4 + $0x4] sm:$0xf] %vm752_vm8, %v745_v37  ;;  %v698_v39 = vpop.f32.mrb[5].mxu0 }
 0x104   : > { %v948_v40 = vpop.f32.mrb[6].mxu0 }
 0x105   : > { %v701_v41 = vpop.f32.mrb[7].mxu0 }
 0x10e   : > { %v937_v42 = vpop.f32.mrb[4].mxu1 }
 0x10f   : > { %v955_v43 = vadd.f32 %v947_v38, %v937_v42  ;;  %v539_v44 = vpop.f32.mrb[5].mxu1 }
 0x110   : > { %v956_v45 = vadd.f32 %v698_v39, %v539_v44  ;;  %v938_v46 = vpop.f32.mrb[6].mxu1 }
 0x111   : > { %v734_v47 = vadd.f32 %v955_v43, %v899_v58  ;;  %v957_v48 = vadd.f32 %v948_v40, %v938_v46  ;;  %v542_v49 = vpop.f32.mrb[7].mxu1 }
 0x112   : > { %v732_v50 = vadd.f32 %v956_v45, %v899_v58  ;;  %v958_v51 = vadd.f32 %v701_v41, %v542_v49 }
 0x113   : > { %v742_v52 = vmax.f32 %v734_v47, 0.0  ;;  %v735_v53 = vadd.f32 %v957_v48, %v899_v58 }
 0x114   : > { %v740_v54 = vmax.f32 %v732_v50, 0.0  ;;  %v733_v55 = vadd.f32 %v958_v51, %v899_v58 }
 0x115   : > { %v750_v56 = vpack.c.bf16 %v742_v52, %v742_v52  ;;  %v743_v57 = vmax.f32 %v735_v53, 0.0 }
 0x116   : > { %v748_v60 = vpack.c.bf16 %v740_v54, %v740_v54  ;;  %v741_v61 = vmax.f32 %v733_v55, 0.0 }
 0x117   : > { %759 = vst.msk [vmem:[%s1207_s4 + $0x18] sm:$0xf] %vm752_vm8, %v750_v56  ;;  %v751_v62 = vpack.c.bf16 %v743_v57, %v743_v57 }
 0x118   : > { %757 = vst.msk [vmem:[%s1207_s4 + $0x10] sm:$0xf] %vm752_vm8, %v748_v60  ;;  %v749_v63 = vpack.c.bf16 %v741_v61, %v741_v61 }
 0x119   : > { %760 = vst.msk [vmem:[%s1207_s4 + $0x1c] sm:$0xf] %vm752_vm8, %v751_v62 }
 0x11a   : > { %758 = vst.msk [vmem:[%s1207_s4 + $0x14] sm:$0xf] %vm752_vm8, %v749_v63 }
 0x11b PF: > { %s13_s14 = sadd.s32 1, %s1024_s14   ;;  %s1242_s12 = smov %s1020_s13 }
 0x11c   : > { %p10_p5 = scmp.ge.s32.totalorder %s13_s14, 4   ;;  %s1243_s13 = smov %s1245_s15 }
 0x11e   :  { %12 = sbr.rel (!%p10_p5) target bundleno = 2 (0x2), region = 64 }

</bundles_post_ra>
